<compile_context>
chip_gen: v5e
topology: v5e:2x2
jax: 0.10.0
libtpu: 0.0.40
codegen_flags: <defaults>
</compile_context>

<pallas_src>
import functools

import jax
import jax.numpy as jnp
from jax import lax
from jax.experimental import pallas as pl
from jax.experimental.pallas import tpu as pltpu


def _vmem_capacity_bytes():
    """Per-core VMEM capacity; conservative (v7x) fallback if query fails."""
    try:
        return int(pltpu.get_tpu_info().vmem_capacity_bytes)
    except Exception:
        return 64 * 1024 * 1024


def _nll_sum_kernel(tgt_ref, pred_ref, out_ref, *, tile_n):
    """Accumulates sum_i pred[i, target[i]] into the resident (1,1) f32 output."""
    i = pl.program_id(0)

    @pl.when(i == 0)
    def _init():
        out_ref[...] = jnp.zeros_like(out_ref)

    pred = pred_ref[...]                                   # (tile_n, C), native dtype
    if tile_n % 8 == 0:
        start = pl.multiple_of(i * tile_n, 8)
    else:  # single full block (i == 0)
        start = i * tile_n
    tgt = tgt_ref[pl.ds(start, tile_n), :]                 # (tile_n, 1) int32; pad rows = -1

    tn, c = pred.shape
    cls_ids = lax.broadcasted_iota(jnp.int32, (tn, c), 1)
    hit = cls_ids == tgt                                   # one-hot; padded rows never hit
    picked = jnp.where(hit, pred, jnp.zeros_like(pred))    # select (not mul): blocks garbage
    out_ref[...] = out_ref[...] + jnp.sum(picked, dtype=jnp.float32)


def nll_loss(pred, target, *, tile_n=None, xla_fast_path_bytes=1 << 20):
    """pred: (N, C) log-probs (f32 or bf16); target: (N,) int. Returns scalar f32."""
    n, c = pred.shape
    itemsize = jnp.dtype(pred.dtype).itemsize

    # Tiny problems: pallas_call launch overhead dominates -> plain XLA.
    if tile_n is None and n * c * itemsize < xla_fast_path_bytes:
        idx = target.reshape(n, 1).astype(jnp.int32)
        gathered = jnp.take_along_axis(pred, idx, axis=1).astype(jnp.float32)
        return -(jnp.sum(gathered) / jnp.float32(n))

    vmem_cap = _vmem_capacity_bytes()
    packing = 8 * max(1, 4 // itemsize)          # sublane row packing: f32->8, bf16->16

    if tile_n is None:
        # Bytes-based, generation-aware: ~8 MiB/buffer on v7x, ~16 MiB on v5e/v6e.
        buf_budget = min(16 * 1024 * 1024, vmem_cap // 8)
        rows = buf_budget // max(1, c * itemsize)
        tile_n = max(packing, (rows // packing) * packing)
    if tile_n >= n:
        tile_n = n                               # single full block (always legal)
    else:
        tile_n = max(packing, (tile_n // packing) * packing)

    num_blocks = pl.cdiv(n, tile_n)
    n_pad = num_blocks * tile_n

    # Target: padded with -1 (never matches a class id), loaded once (resident).
    tgt = target.reshape(n).astype(jnp.int32)
    if n_pad > n:
        tgt = jnp.pad(tgt, (0, n_pad - n), constant_values=-1)
    tgt2d = tgt.reshape(n_pad, 1)

    # Leave ~16 MiB headroom on v7x (-> 48 MiB), cap at 64 MiB on v5e/v6e.
    vmem_limit = int(min(64 * 1024 * 1024,
                         max(vmem_cap - 16 * 1024 * 1024, 32 * 1024 * 1024)))

    total = pl.pallas_call(
        functools.partial(_nll_sum_kernel, tile_n=tile_n),
        out_shape=jax.ShapeDtypeStruct((1, 1), jnp.float32),
        grid=(num_blocks,),
        in_specs=[
            pl.BlockSpec((n_pad, 1), lambda i: (0, 0)),    # resident target (one DMA)
            pl.BlockSpec((tile_n, c), lambda i: (i, 0)),   # streamed pred tile (native dtype)
        ],
        out_specs=pl.BlockSpec((1, 1), lambda i: (0, 0)),  # resident accumulator
        compiler_params=pltpu.CompilerParams(
            dimension_semantics=("arbitrary",),
            vmem_limit_bytes=vmem_limit,
        ),
    )(tgt2d, pred)

    return -(total[0, 0] / jnp.float32(n))


# Forward of the PyTorch GetLoss module.
def get_loss(pred, target):
    return nll_loss(pred, target)


if __name__ == "__main__":
    key = jax.random.PRNGKey(0)
    k1, k2 = jax.random.split(key)

    # PointNet2 classification: C = 40 classes; modest batch for the demo.
    N, C = 96, 40
    logits = jax.random.normal(k1, (N, C), dtype=jnp.float32)
    pred = jax.nn.log_softmax(logits, axis=-1)             # nll_loss expects log-probs
    target = jax.random.randint(k2, (N,), 0, C, dtype=jnp.int32)

    ref = -jnp.mean(pred[jnp.arange(N), target])

    # Pallas kernel: multi-block grid, N divisible by tile (96 = 3 * 32).
    loss_tiled = nll_loss(pred, target, tile_n=32)
    # Pallas kernel: ragged tail (3 blocks of 40 rows -> 24 padded rows, target = -1).
    loss_ragged = nll_loss(pred, target, tile_n=40)
    # Pallas kernel: single full block.
    loss_single = nll_loss(pred, target, tile_n=N)
    # Pallas kernel: native bf16 path (no in-kernel full-tile upcast).
    pred_bf16 = pred.astype(jnp.bfloat16)
    loss_bf16 = nll_loss(pred_bf16, target, tile_n=32)
    ref_bf16 = -jnp.mean(pred_bf16[jnp.arange(N), target].astype(jnp.float32))
    # Tiny-problem fast path (pure XLA, no pallas_call).
    loss_fast = nll_loss(pred, target)

    jax.block_until_ready((loss_tiled, loss_ragged, loss_single, loss_bf16, loss_fast))

    assert jnp.allclose(loss_tiled, ref, atol=1e-5, rtol=1e-5), (loss_tiled, ref)
    assert jnp.allclose(loss_ragged, ref, atol=1e-5, rtol=1e-5), (loss_ragged, ref)
    assert jnp.allclose(loss_single, ref, atol=1e-5, rtol=1e-5), (loss_single, ref)
    assert jnp.allclose(loss_fast, ref, atol=1e-5, rtol=1e-5), (loss_fast, ref)
    assert jnp.allclose(loss_bf16, ref_bf16, atol=1e-2, rtol=1e-2), (loss_bf16, ref_bf16)

    print("KERNEL_OK")
</pallas_src>

<mosaic_0001>
module attributes {stable_mosaic.version = 11 : i64} {
  func.func @_nll_sum_kernel(%arg0: i32, %arg1: memref<96x1xi32, #tpu.memory_space<vmem>>, %arg2: memref<32x40xf32, #tpu.memory_space<vmem>>, %arg3: memref<1x1xf32, #tpu.memory_space<vmem>>) attributes {dimension_semantics = [#tpu.dimension_semantics<arbitrary>], iteration_bounds = array<i64: 3>, scalar_prefetch = 0 : i64, scratch_operands = 0 : i64, tpu.core_type = #tpu.core_type<tc>, window_params = [{pipeline_mode = #tpu.pipeline_mode<synchronous>, transform_indices = @transform_0, window_bounds = array<i64: 96, 1>}, {transform_indices = @transform_1, window_bounds = array<i64: 32, 40>}, {pipeline_mode = #tpu.pipeline_mode<synchronous>, transform_indices = @transform_2, window_bounds = array<i64: 1, 1>}]} {
    %c0_i32 = arith.constant 0 : i32
    %0 = arith.cmpi eq, %arg0, %c0_i32 : i32
    %1 = arith.extui %0 : i1 to i32
    %c0_i32_0 = arith.constant 0 : i32
    %2 = arith.cmpi ne, %1, %c0_i32_0 : i32
    scf.if %2 {
      %cst_8 = arith.constant 0.000000e+00 : f32
      %21 = vector.broadcast %cst_8 : f32 to vector<1x1xf32>
      %c0_9 = arith.constant 0 : index
      %c0_10 = arith.constant 0 : index
      %22 = vector.load %arg3[%c0_9, %c0_10] : memref<1x1xf32, #tpu.memory_space<vmem>>, vector<1x1xf32>
      tpu.vector_store %arg3[%c0_9, %c0_10], %21 {strides = array<i32>} : memref<1x1xf32, #tpu.memory_space<vmem>>, vector<1x1xf32>,
    } else {
    }
    %c0 = arith.constant 0 : index
    %c0_1 = arith.constant 0 : index
    %3 = vector.load %arg2[%c0, %c0_1] : memref<32x40xf32, #tpu.memory_space<vmem>>, vector<32x40xf32>
    %c32_i32 = arith.constant 32 : i32
    %4 = arith.muli %arg0, %c32_i32 : i32
    %5 = tpu.assume_multiple %4, 8 : i32
    %6 = arith.index_cast %5 : i32 to index
    %c0_2 = arith.constant 0 : index
    %7 = vector.load %arg1[%6, %c0_2] : memref<96x1xi32, #tpu.memory_space<vmem>>, vector<32x1xi32>
    %8 = tpu.iota {dimensions = array<i32: 1>} : vector<32x40xi32>
    %9 = vector.broadcast %7 : vector<32x1xi32> to vector<32x40xi32>
    %10 = arith.cmpi eq, %8, %9 : vector<32x40xi32>
    %cst = arith.constant 0.000000e+00 : f32
    %11 = vector.broadcast %cst : f32 to vector<32x40xf32>
    %12 = arith.select %10, %3, %11 : vector<32x40xi1>, vector<32x40xf32>
    %c0_3 = arith.constant 0 : index
    %c0_4 = arith.constant 0 : index
    %13 = vector.load %arg3[%c0_3, %c0_4] : memref<1x1xf32, #tpu.memory_space<vmem>>, vector<1x1xf32>
    %14 = vector.shape_cast %12 : vector<32x40xf32> to vector<1x32x40xf32>
    %cst_5 = arith.constant dense<0.000000e+00> : vector<1xf32>
    %15 = vector.multi_reduction <add>, %14, %cst_5 [1, 2] : vector<1x32x40xf32> to vector<1xf32>
    %16 = vector.shape_cast %15 : vector<1xf32> to vector<1x1x1xf32>
    %17 = vector.extract %16[0, 0, 0] : f32 from vector<1x1x1xf32>
    %18 = vector.broadcast %17 : f32 to vector<1x1xf32>
    %19 = arith.addf %13, %18 : vector<1x1xf32>
    %c0_6 = arith.constant 0 : index
    %c0_7 = arith.constant 0 : index
    %20 = vector.load %arg3[%c0_6, %c0_7] : memref<1x1xf32, #tpu.memory_space<vmem>>, vector<1x1xf32>
    tpu.vector_store %arg3[%c0_6, %c0_7], %19 {strides = array<i32>} : memref<1x1xf32, #tpu.memory_space<vmem>>, vector<1x1xf32>,
    return
  }
  func.func @transform_0(%arg0: i32) -> (i32, i32) {
    %c0_i32 = arith.constant 0 : i32
    %c0_i32_0 = arith.constant 0 : i32
    %c0_i32_1 = arith.constant 0 : i32
    return %c0_i32, %c0_i32_0 : i32, i32
  }
  func.func @transform_1(%arg0: i32) -> (i32, i32) {
    %c0_i32 = arith.constant 0 : i32
    %c0_i32_0 = arith.constant 0 : i32
    return %arg0, %c0_i32 : i32, i32
  }
  func.func @transform_2(%arg0: i32) -> (i32, i32) {
    %c0_i32 = arith.constant 0 : i32
    %c0_i32_0 = arith.constant 0 : i32
    %c0_i32_1 = arith.constant 0 : i32
    return %c0_i32, %c0_i32_0 : i32, i32
  }
}

</mosaic_0001>

<bundles_post_ra>
// kernel: tpu_custom_call.1
= control target key start
LH: loop header
LB: loop body
LE: loop exit
PB: predicated region body
PF: predicated region fallthrough
CT: control target
= control target key end

     0   :  { %7 = vsyncpa [#allocation3], 0  ;;  %s333_s9 = smov 0   ;;  %s365_s0 = inlined_call_operand.vmem [shape: s32[96,1], index: 0, kind: input, shape index: {}]   ;;  %s366_s1 = inlined_call_operand.vmem [shape: f32[96,40], index: 1, kind: input, shape index: {}]   ;;  %s367_s2 = inlined_call_operand.hbm [shape: f32[1,1], index: 2, kind: output, shape index: {}]  }
   0x1 LB: > { %s339_s10 = sadd.s32 4294967295, %s313_s9   ;;  %p245_p0 = scmp.ge.s32.totalorder %s313_s9, 1  ;;  %s313_s9 = sphi %s333_s9, %s13_s9  }
   0x2   : > { %p109_p1 = scmp.lt.s32.totalorder %s313_s9, 4 }
   0x4   : > { %p110_p2 = pnand %p245_p0, %p109_p1 }
   0x5   : > { %s246_s11 = sshll.u32 (!%p110_p2), %s339_s10, 2  ;;  %p248_p4 = scmp.ne.s32.totalorder (!%p110_p2), %s339_s10, 0 }
   0x6   : > { %113 = sbr.rel (%p110_p2) target bundleno = 338 (0x152), region = 28  ;;  %p127_p3 = scmp.lt.s32.totalorder (!%p110_p2), %s246_s11, 11 }
   0xb   : > { %s369_s11 = smov (!%p127_p3, %s246_s11), 11  ;;  %135 = sbr.rel (%p248_p4) target bundleno = 18 (0x12), region = 32 }
   0xc   : > { %s247_s12 = sshll.u32 %s369_s11, 3 }
   0xd   : > { %s347_s15 = scalar_lea.vmem %s366_s1, %s247_s12 }
  0x10   : > { %vm136_vm0 = vcmask 0   ;;  %v315_v0 = vmov 0.0  }
  0x11   : > { %137 = vst.msk [vmem:[#allocation2] sm:$0x1] %vm136_vm0, %v315_v0 }
  0x12 PF: > { %s249_s16 = sshll.u32 %s339_s10, 5  ;;  %v316_v1 = vmov 0   ;;  %v148_v6 = vlaneseq  ;;  %v138_v10 = vld [vmem:[%s347_s15] sm:$0xff]  ;;  %v140_v11 = vld [vmem:[%s347_s15 + $0x10] sm:$0xff]  ;;  %v139_v12 = vld [vmem:[%s347_s15 + $0x8] sm:$0xff]  ;;  %vm171_vm3 = vcmask 326656  }
  0x13   : > { %274 = vset.pattern.permute.xlu1 %v316_v1  ;;  %273 = vset.pattern.permute.xlu0 %v316_v1  ;;  %s143_s19 = scalar_lea.vmem %s365_s0, %s249_s16  ;;  %v141_v16 = vld [vmem:[%s347_s15 + $0x18] sm:$0xff]  ;;  %s317_s20 = smov [#allocation2]   ;;  %vm190_vm6 = vcmask 0  }
  0x14   : > { %v146_v2 = vld [vmem:[%s143_s19 + $0x10] sm:$0xff]  ;;  %v144_v3 = vld [vmem:[%s143_s19] sm:$0xff]  ;;  %v147_v4 = vld [vmem:[%s143_s19 + $0x18] sm:$0xff]  ;;  %v149_v9 = vand.u32 127, %v148_v6  ;;  %s198_s21 = sshll.u32 %s317_s20, 4  ;;  %s200_s24 = sshll.u32 %s367_s2, 4  ;;  %s199_s21 = int_to_ptr.vmem [resolvable:$true] %s198_s21  ;;  %s201_s24 = int_to_ptr.hbm [resolvable:$true] %s200_s24 }
  0x15   : > { %157 = vperm.xlu1 %274, %v146_v2   ;;  %151 = vperm.xlu0 %273, %v144_v3   ;;  %v145_v5 = vld [vmem:[%s143_s19 + $0x8] sm:$0xff]  ;;  %p260_p5 = scmp.eq.s32.totalorder %s339_s10, 2 }
  0x18   : > { %v170_v34 = vld [vmem:[#allocation2] sm:$0x1] }
  0x1d   : > { %160 = vperm.xlu1 %274, %v147_v4   ;;  %154 = vperm.xlu0 %273, %v145_v5  }
  0x87   : > { %v158_v7 = vpop.permute.xlu1 %157  ;;  %v152_v8 = vpop.permute.xlu0 %151 }
  0x88   : > { %vm162_vm1 = vcmp.eq.s32.totalorder %v149_v9, %v152_v8  ;;  %vm164_vm2 = vcmp.eq.s32.totalorder %v149_v9, %v158_v7 }
  0x89   : > { %v166_v13 = vsel %vm162_vm1, %v138_v10, 0.0  ;;  %v168_v17 = vsel %vm164_vm2, %v140_v11, 0.0 }
  0x8a   : > { %v172_v19 = vsel %vm171_vm3, %v166_v13, 0.0  ;;  %v175_v23 = vsel %vm171_vm3, %v168_v17, 0.0 }
  0x8f   : > { %v161_v14 = vpop.permute.xlu1 %160  ;;  %v155_v15 = vpop.permute.xlu0 %154 }
  0x90   : > { %vm165_vm4 = vcmp.eq.s32.totalorder %v149_v9, %v161_v14  ;;  %vm163_vm5 = vcmp.eq.s32.totalorder %v149_v9, %v155_v15 }
  0x91   : > { %v167_v18 = vsel %vm163_vm5, %v139_v12, 0.0  ;;  %v169_v21 = vsel %vm165_vm4, %v141_v16, 0.0 }
  0x92   : > { %v173_v20 = vsel %vm171_vm3, %v167_v18, 0.0  ;;  %v177_v25 = vsel %vm171_vm3, %v169_v21, 0.0 }
  0x93   : > { %v174_v22 = vadd.f32 %v173_v20, %v172_v19 }
  0x95   : > { %v176_v24 = vadd.f32 %v175_v23, %v174_v22 }
  0x97   : > { %v178_v26 = vadd.f32 %v177_v25, %v176_v24 }
  0x99   : > { %179 = vadd.xlane.f32.xlu2 %v178_v26 }
 0x10c   : > { %v180_v27 = vpop.xlane.xlu2 %179 }
 0x10d   : > { %v181_v28 = vrot.slane %v180_v27, 4 }
 0x10f   : > { %v182_v29 = vadd.f32 %v181_v28, %v180_v27 }
 0x111   : > { %v183_v30 = vrot.slane %v182_v29, 2 }
 0x113   : > { %v184_v31 = vadd.f32 %v183_v30, %v182_v29 }
 0x115   : > { %v185_v32 = vrot.slane %v184_v31, 1 }
 0x117   : > { %v186_v33 = vadd.f32 %v185_v32, %v184_v31 }
 0x119   : > { %254 = vpush %v186_v33 }
 0x14a   : > { %s255_s25 = spop %254 }
 0x14b   : > { %v188_v35 = vstv %s255_s25 }
 0x14c   : > { %v189_v36 = vadd.f32 %v188_v35, %v170_v34 }
 0x14e   : > { %191 = vst.msk [vmem:[#allocation2] sm:$0x1] %vm190_vm6, %v189_v36 }
 0x14f   : > { %257 = dma.vmem_to_hbm [thread:$0]  (%p260_p5), %s199_s21, 16, %s201_s24, [#allocation3]  }
 0x150   : > { %308 = dma.done.wait (%p260_p5), [#allocation3], 16  }
 0x151   : > { %310 = vsyncadd (%p260_p5), [#allocation3], 4294967280 }
 0x152 PF: > { %s13_s9 = sadd.s32 1, %s313_s9  }
 0x153   : > { %p10_p6 = scmp.ge.s32.totalorder %s13_s9, 5  }
 0x155   :  { %12 = sbr.rel (!%p10_p6) target bundleno = 1 (0x1), region = 60 }
 0x15a   :  { %214 = vsyncpa [#allocation3], 1 }
 0x15b   :  { %216 = vsyncpa [#allocation3 + $0x1], 1 }

</bundles_post_ra>
